<compile_context>
chip_gen: v5e
topology: v5e:2x2
jax: 0.10.0
libtpu: 0.0.40
codegen_flags: <defaults>
</compile_context>

<pallas_src>
import functools

import jax
import jax.numpy as jnp
from jax.experimental import pallas as pl
from jax.experimental.pallas import tpu as pltpu

_LANE = 128        # pad classifier dim to a full lane width
_TILE_B = 512      # batch tile used only when B is large (v7x two-TC split)


def _fused_classifier_kernel(x_ref, w_ref, b_ref, o_ref):
    """o = x @ W_fused + b_fused, all operands resident in VMEM."""
    o_ref[...] = (
        jnp.dot(x_ref[...], w_ref[...], preferred_element_type=jnp.float32)
        + b_ref[...]
    ).astype(o_ref.dtype)


def prepare_fused_params(w1, b1, w2, b2, lane_pad=_LANE):
    """One-time (weight-load time) prep: fuse the two Linear layers.

    Args:
      w1: (1024, D)  PyTorch layout (out, in)
      b1: (1024,)
      w2: (C, 1024)  PyTorch layout (out, in)
      b2: (C,)
    Returns:
      w_fused_p: (D, Cp) float32, Cp = C rounded up to 128, zero-padded cols
      b_fused_p: (1, Cp) float32
    """
    hi = jax.lax.Precision.HIGHEST
    w_fused = jnp.dot(w1.T, w2.T, precision=hi)          # (D, C)
    b_fused = jnp.dot(b1, w2.T, precision=hi) + b2       # (C,)
    c = w_fused.shape[1]
    cp = pl.cdiv(c, lane_pad) * lane_pad
    w_fused_p = jnp.zeros((w_fused.shape[0], cp), w_fused.dtype).at[:, :c].set(w_fused)
    b_fused_p = jnp.zeros((1, cp), b_fused.dtype).at[0, :c].set(b_fused)
    return w_fused_p, b_fused_p


@functools.partial(jax.jit, static_argnames=("num_classes",))
def simple_classifier(x, w_fused_p, b_fused_p, *, num_classes):
    """Per-call forward pass: single fused matmul kernel, then slice off padding.

    Args:
      x:         (B, D) float32
      w_fused_p: (D, Cp) float32 from prepare_fused_params
      b_fused_p: (1, Cp) float32 from prepare_fused_params
    Returns:
      (B, num_classes) float32
    """
    B, D = x.shape
    Cp = w_fused_p.shape[1]
    out_shape = jax.ShapeDtypeStruct((B, Cp), x.dtype)

    if B >= 2 * _TILE_B and B % _TILE_B == 0:
        # Large-batch path (v7x): tile rows, mark the axis parallel so both
        # TensorCores take half the batch; tiny fused weights stay pinned.
        out_p = pl.pallas_call(
            _fused_classifier_kernel,
            out_shape=out_shape,
            grid=(B // _TILE_B,),
            in_specs=[
                pl.BlockSpec((_TILE_B, D), lambda i: (i, 0)),
                pl.BlockSpec((D, Cp), lambda i: (0, 0)),
                pl.BlockSpec((1, Cp), lambda i: (0, 0)),
            ],
            out_specs=pl.BlockSpec((_TILE_B, Cp), lambda i: (i, 0)),
            compiler_params=pltpu.CompilerParams(
                dimension_semantics=("parallel",)),
        )(x, w_fused_p, b_fused_p)
    else:
        # Small-batch path: grid-less call, whole arrays in VMEM, no pipeline
        # bookkeeping (~0.35 us/step saved on a ~1-2 us kernel).
        vmem = pl.BlockSpec(memory_space=pltpu.MemorySpace.VMEM)
        out_p = pl.pallas_call(
            _fused_classifier_kernel,
            out_shape=out_shape,
            in_specs=[vmem, vmem, vmem],
            out_specs=vmem,
        )(x, w_fused_p, b_fused_p)

    return out_p[:, :num_classes]


if __name__ == "__main__":
    # Module config: latent_dim=32, num_classes=10, hidden=1024, batch=8.
    latent_dim = 32
    num_classes = 10
    batch = 8
    hidden = 1024

    key = jax.random.PRNGKey(0)
    k_x, k_w1, k_b1, k_w2, k_b2 = jax.random.split(key, 5)

    # Deterministic init (PyTorch Linear uses uniform(-1/sqrt(in), 1/sqrt(in))).
    bound1 = 1.0 / (latent_dim ** 0.5)
    bound2 = 1.0 / (hidden ** 0.5)
    x = jax.random.normal(k_x, (batch, latent_dim), dtype=jnp.float32)
    w1 = jax.random.uniform(k_w1, (hidden, latent_dim), jnp.float32, -bound1, bound1)
    b1 = jax.random.uniform(k_b1, (hidden,), jnp.float32, -bound1, bound1)
    w2 = jax.random.uniform(k_w2, (num_classes, hidden), jnp.float32, -bound2, bound2)
    b2 = jax.random.uniform(k_b2, (num_classes,), jnp.float32, -bound2, bound2)

    # One-time weight prep (outside the per-call hot path).
    w_fused_p, b_fused_p = jax.block_until_ready(
        prepare_fused_params(w1, b1, w2, b2))

    out = simple_classifier(x, w_fused_p, b_fused_p, num_classes=num_classes)
    out = jax.block_until_ready(out)

    # Reference check against plain JAX (same math as the PyTorch forward).
    ref = (x @ w1.T + b1) @ w2.T + b2
    assert out.shape == (batch, num_classes)
    assert jnp.allclose(out, ref, atol=1e-3, rtol=1e-3), "mismatch vs reference"

    print("KERNEL_OK")
</pallas_src>

<mosaic_0001>
module attributes {stable_mosaic.version = 11 : i64} {
  func.func @_fused_classifier_kernel(%arg0: memref<8x32xf32, #tpu.memory_space<vmem>>, %arg1: memref<32x128xf32, #tpu.memory_space<vmem>>, %arg2: memref<1x128xf32, #tpu.memory_space<vmem>>, %arg3: memref<8x128xf32, #tpu.memory_space<vmem>>) attributes {dimension_semantics = [], scalar_prefetch = 0 : i64, scratch_operands = 0 : i64, tpu.core_type = #tpu.core_type<tc>} {
    %c0 = arith.constant 0 : index
    %c0_0 = arith.constant 0 : index
    %0 = vector.load %arg0[%c0, %c0_0] : memref<8x32xf32, #tpu.memory_space<vmem>>, vector<8x32xf32>
    %c0_1 = arith.constant 0 : index
    %c0_2 = arith.constant 0 : index
    %1 = vector.load %arg1[%c0_1, %c0_2] : memref<32x128xf32, #tpu.memory_space<vmem>>, vector<32x128xf32>
    %cst = arith.constant dense<0.000000e+00> : vector<8x128xf32>
    %2 = tpu.matmul %0, %1, %cst {dimension_numbers = #tpu.dot_dimension_numbers<[1], [0], [0], [1], [0, 0, 1, 1], [], []>} : vector<8x32xf32>, vector<32x128xf32>, vector<8x128xf32> -> vector<8x128xf32>
    %c0_3 = arith.constant 0 : index
    %c0_4 = arith.constant 0 : index
    %3 = vector.load %arg2[%c0_3, %c0_4] : memref<1x128xf32, #tpu.memory_space<vmem>>, vector<1x128xf32>
    %4 = vector.broadcast %3 : vector<1x128xf32> to vector<8x128xf32>
    %5 = arith.addf %2, %4 : vector<8x128xf32>
    %c0_5 = arith.constant 0 : index
    %c0_6 = arith.constant 0 : index
    %6 = vector.load %arg3[%c0_5, %c0_6] : memref<8x128xf32, #tpu.memory_space<vmem>>, vector<8x128xf32>
    tpu.vector_store %arg3[%c0_5, %c0_6], %5 {strides = array<i32>} : memref<8x128xf32, #tpu.memory_space<vmem>>, vector<8x128xf32>,
    return
  }
}

</mosaic_0001>

<bundles_post_ra>
// kernel: simple_classifier.1
= control target key start
LH: loop header
LB: loop body
LE: loop exit
PB: predicated region body
PF: predicated region fallthrough
CT: control target
= control target key end

     0   :  { %8 = vsyncpa [#allocation3], 0  ;;  %s219_s0 = inlined_call_operand.hbm [shape: f32[8,32], index: 0, kind: input, shape index: {}]   ;;  %s220_s1 = inlined_call_operand.hbm [shape: f32[32,128], index: 1, kind: input, shape index: {}]   ;;  %s221_s2 = inlined_call_operand.vmem [shape: f32[1,128], index: 2, kind: input, shape index: {}]   ;;  %s222_s3 = inlined_call_operand.hbm [shape: f32[8,128], index: 3, kind: output, shape index: {}]  }
   0x1   :  { %9 = vsyncpa [#allocation6], 0 }
   0x2   :  { %10 = vsyncpa [#allocation4], 0  ;;  %s16_s14 = sshll.u32 %s219_s0, 4  ;;  %s182_s15 = smov [#allocation2]   ;;  %s17_s14 = int_to_ptr.hbm [resolvable:$true] %s16_s14 }
   0x3   :  { %s18_s16 = sshll.u32 %s182_s15, 4  ;;  %s26_s19 = sshll.u32 %s220_s1, 4  ;;  %s19_s16 = int_to_ptr.vmem [resolvable:$true] %s18_s16  ;;  %s27_s19 = int_to_ptr.hbm [resolvable:$true] %s26_s19 }
   0x4   :  { %21 = dma.hbm_to_vmem [thread:$0]  %s17_s14, 128, %s19_s16, [#allocation3]  }
   0x5   :  { %s183_s20 = smov [#allocation5]   ;;  %s184_s22 = smov 128  }
   0x6   :  { %s28_s21 = sshll.u32 %s183_s20, 4  ;;  %s185_s23 = smov 8   ;;  %s29_s21 = int_to_ptr.vmem [resolvable:$true] %s28_s21 }
   0x7   :  { %34 = dma.hbm_to_vmem [thread:$0]  %s27_s19, 512, %s29_s21, [#allocation6], %s184_s22, %s184_s22, %s185_s23  }
   0x8   :  { %176 = dma.done.wait [#allocation3], 128  }
   0x9   :  { %177 = vsyncadd [#allocation3], 4294967168 }
   0xa   :  { %178 = dma.done.wait [#allocation6], 512  }
   0xb   :  { %179 = vsyncadd [#allocation6], 4294966784  ;;  %v49_v0 = vld [vmem:[#allocation5 + $0x18] sm:$0xff]  ;;  %v48_v1 = vld [vmem:[#allocation5 + $0x10] sm:$0xff]  ;;  %vm54_vm0 = vcmask 261120   ;;  %s186_s24 = smov [#allocation7]  }
   0xc   :  { %70 = vmatpush.msra.mxu0 %v49_v0  ;;  %v47_v2 = vld [vmem:[#allocation5 + $0x8] sm:$0xff]  ;;  %v46_v3 = vld [vmem:[#allocation5] sm:$0xff]  ;;  %v45_v4 = vld [vmem:[#allocation2] sm:$0xff]  ;;  %s84_s25 = sshll.u32 %s186_s24, 4  ;;  %s86_s28 = sshll.u32 %s222_s3, 4  ;;  %s85_s25 = int_to_ptr.vmem [resolvable:$true] %s84_s25  ;;  %s87_s28 = int_to_ptr.hbm [resolvable:$true] %s86_s28 }
   0xd   :  { %v103_v5 = vld [vmem:[%s221_s2] ss:$0 sm:$0xff] }
   0xe   :  { %71 = vmatpush.msra.mxu0 %v48_v1 }
  0x10   :  { %72 = vmatpush.msra.mxu0 %v47_v2 }
  0x12   :  { %73 = vmatpush.msra.mxu0 %v46_v3 }
  0x13   :  { %97 = vmatmul.msk.f32.vlgmr.msra.gmra.mxu0 %vm54_vm0, %v45_v4 }
  0x90   :  { %v75_v6 = vpop.f32.mrf.mxu0 }
  0x91   :  { %v76_v7 = vadd.f32 %v103_v5, %v75_v6 }
  0x93   :  { %78 = vst [vmem:[#allocation7] sm:$0xff] %v76_v7 }
  0x94   :  { %89 = dma.vmem_to_hbm [thread:$0]  %s85_s25, 128, %s87_s28, [#allocation4]  }
  0x95   :  { %180 = dma.done.wait [#allocation4], 128  }
  0x96   :  { %181 = vsyncadd [#allocation4], 4294967168 }
  0x97   :  { %94 = vsyncpa [#allocation3], 1 }
  0x98   :  { %95 = vsyncpa [#allocation6], 1 }
  0x99   :  { %96 = vsyncpa [#allocation4], 1 }

</bundles_post_ra>
